<compile_context>
chip_gen: v7x
topology: tpu7x:2x2x1
jax: 0.10.0
libtpu: 0.0.40
codegen_flags: <defaults>
</compile_context>

<pallas_src>
import numpy as np

import jax
import jax.numpy as jnp
from jax.experimental import pallas as pl
from jax.experimental.pallas import tpu as pltpu

C_IN = 3
C_HID = 4
H = W = 6              # Linear(4*6*6, 1) forces a 6x6 spatial input
HW = H * W
F_IN = C_IN * HW       # 108
F_HID = C_HID * HW     # 144
EPS = 1e-5
NEG_SLOPE = 0.2


# ----------------------------------------------------------------------------
# Kernel
# ----------------------------------------------------------------------------
def toy_disc_kernel(x_ref, m0_ref, g0_ref, b0_ref, m1_ref, g1_ref, b1_ref,
                    pool_ref, poolt_ref, lw_ref, lb_ref, out_ref):
    batch = x_ref.shape[0]
    inv_n = 1.0 / float(batch * HW)      # BN normalizer (biased variance)

    def bn_lrelu(pre, gamma, beta):
        # One-pass batch statistics: sum and sum-of-squares over the batch
        # (sublane reduce), then pooled per channel with a tiny MXU dot.
        s1 = jnp.sum(pre, axis=0, keepdims=True)            # (1, 144)
        s2 = jnp.sum(pre * pre, axis=0, keepdims=True)       # (1, 144)
        ch_sum = jnp.dot(s1, pool_ref[...],
                         preferred_element_type=jnp.float32)  # (1, 4)
        ch_sq = jnp.dot(s2, pool_ref[...],
                        preferred_element_type=jnp.float32)   # (1, 4)
        mean = ch_sum * inv_n
        var = ch_sq * inv_n - mean * mean                     # E[x^2] - E[x]^2
        scale = gamma * jax.lax.rsqrt(var + EPS)              # (1, 4)
        shift = beta - mean * scale                           # (1, 4)
        # Broadcast the per-channel affine back to the 144-lane slab (MXU dot,
        # avoids any strided channel broadcast on the VPU).
        scale_l = jnp.dot(scale, poolt_ref[...],
                          preferred_element_type=jnp.float32)  # (1, 144)
        shift_l = jnp.dot(shift, poolt_ref[...],
                          preferred_element_type=jnp.float32)  # (1, 144)
        y = pre * scale_l + shift_l
        return jnp.where(y >= 0, y, NEG_SLOPE * y)             # LeakyReLU(0.2)

    # conv0 (as dense matmul, bias dropped — cancelled by BN) + bn0 + lrelu
    f0 = bn_lrelu(
        jnp.dot(x_ref[...], m0_ref[...], preferred_element_type=jnp.float32),
        g0_ref[...], b0_ref[...])
    # conv1 + bn1 + lrelu
    f1 = bn_lrelu(
        jnp.dot(f0, m1_ref[...], preferred_element_type=jnp.float32),
        g1_ref[...], b1_ref[...])
    # linear (flatten order already matches the slab layout) + sigmoid
    logit = jnp.dot(f1, lw_ref[...],
                    preferred_element_type=jnp.float32) + lb_ref[...]
    out_ref[...] = jax.nn.sigmoid(logit)


# ----------------------------------------------------------------------------
# Wrapper-side weight restructuring (pure layout plumbing, done once)
# ----------------------------------------------------------------------------
def _shift_mat(n):
    """s[k, i, o] = 1 iff input row i == output row o + k - 1 (same-pad 3-tap)."""
    s = np.zeros((3, n, n), np.float32)
    for k in range(3):
        for o in range(n):
            i = o + k - 1
            if 0 <= i < n:
                s[k, i, o] = 1.0
    return s


def _conv_as_dense(w):
    """torch conv weight (Co, Ci, 3, 3) -> dense (Ci*H*W, Co*H*W) matrix acting
    on C-major flattened activations (same order as torch .view flatten)."""
    co, ci = w.shape[0], w.shape[1]
    sy = jnp.asarray(_shift_mat(H))
    sx = jnp.asarray(_shift_mat(W))
    m = jnp.einsum('oikl,kpy,lqx->ipqoyx', w, sy, sx)
    return m.reshape(ci * HW, co * HW)


def _channel_pool_mats():
    """One-hot pooling matrices mapping the 144-lane slab <-> 4 channels."""
    pool = np.zeros((F_HID, C_HID), np.float32)
    for c in range(C_HID):
        pool[c * HW:(c + 1) * HW, c] = 1.0
    return jnp.asarray(pool), jnp.asarray(pool.T)


def toy_discriminator_forward(x, params):
    """x: (B, 3, 6, 6) float32, NCHW (PyTorch convention). Returns (B, 1)."""
    batch = x.shape[0]
    x_flat = x.reshape(batch, F_IN)                 # C-major flatten (torch order)

    m0 = _conv_as_dense(params['conv0_w'])          # (108, 144)
    m1 = _conv_as_dense(params['conv1_w'])          # (144, 144)
    # conv0_b / conv1_b intentionally dropped: cancelled by train-mode BN mean.
    g0 = params['bn0_g'].reshape(1, C_HID)
    b0 = params['bn0_b'].reshape(1, C_HID)
    g1 = params['bn1_g'].reshape(1, C_HID)
    b1 = params['bn1_b'].reshape(1, C_HID)
    pool, poolt = _channel_pool_mats()
    lw = jnp.transpose(params['linear_w'])          # (144, 1)
    lb = params['linear_b'].reshape(1, 1)

    vmem = pl.BlockSpec(memory_space=pltpu.MemorySpace.VMEM)
    out = pl.pallas_call(
        toy_disc_kernel,
        out_shape=jax.ShapeDtypeStruct((batch, 1), jnp.float32),
        in_specs=[vmem] * 11,
        out_specs=vmem,
    )(x_flat, m0, g0, b0, m1, g1, b1, pool, poolt, lw, lb)
    return out


# ----------------------------------------------------------------------------
# Pure-JAX reference (conv-based, with conv biases, train-mode BN)
# ----------------------------------------------------------------------------
def reference_forward(x, p):
    hi = jax.lax.Precision.HIGHEST

    def conv(t, w, b):
        y = jax.lax.conv_general_dilated(
            t, w, (1, 1), ((1, 1), (1, 1)),
            dimension_numbers=('NCHW', 'OIHW', 'NCHW'), precision=hi)
        return y + b.reshape(1, -1, 1, 1)

    def bn(t, g, be):
        m = jnp.mean(t, axis=(0, 2, 3), keepdims=True)
        v = jnp.mean(jnp.square(t - m), axis=(0, 2, 3), keepdims=True)
        return (g.reshape(1, -1, 1, 1) * (t - m) * jax.lax.rsqrt(v + EPS)
                + be.reshape(1, -1, 1, 1))

    lrelu = lambda t: jnp.where(t >= 0, t, NEG_SLOPE * t)
    f = lrelu(bn(conv(x, p['conv0_w'], p['conv0_b']), p['bn0_g'], p['bn0_b']))
    f = lrelu(bn(conv(f, p['conv1_w'], p['conv1_b']), p['bn1_g'], p['bn1_b']))
    f = f.reshape(x.shape[0], -1)
    logit = jnp.dot(f, p['linear_w'].T, precision=hi) + p['linear_b']
    return jax.nn.sigmoid(logit)


if __name__ == "__main__":
    key = jax.random.PRNGKey(0)
    ks = jax.random.split(key, 11)
    B = 2
    params = {
        'conv0_w': 0.1 * jax.random.normal(ks[0], (4, 3, 3, 3), jnp.float32),
        'conv0_b': 0.05 * jax.random.normal(ks[1], (4,), jnp.float32),
        'bn0_g': 1.0 + 0.1 * jax.random.normal(ks[2], (4,), jnp.float32),
        'bn0_b': 0.1 * jax.random.normal(ks[3], (4,), jnp.float32),
        'conv1_w': 0.1 * jax.random.normal(ks[4], (4, 4, 3, 3), jnp.float32),
        'conv1_b': 0.05 * jax.random.normal(ks[5], (4,), jnp.float32),
        'bn1_g': 1.0 + 0.1 * jax.random.normal(ks[6], (4,), jnp.float32),
        'bn1_b': 0.1 * jax.random.normal(ks[7], (4,), jnp.float32),
        'linear_w': 0.1 * jax.random.normal(ks[8], (1, 4 * H * W), jnp.float32),
        'linear_b': 0.05 * jax.random.normal(ks[9], (1,), jnp.float32),
    }
    x = jax.random.normal(ks[10], (B, 3, H, W), jnp.float32)

    out = jax.block_until_ready(toy_discriminator_forward(x, params))
    ref = jax.block_until_ready(reference_forward(x, params))

    assert out.shape == (B, 1), out.shape
    assert jnp.allclose(out, ref, atol=1e-4, rtol=1e-4), (out, ref)
    print("KERNEL_OK")
</pallas_src>

<mosaic_0001>
module attributes {stable_mosaic.version = 11 : i64} {
  func.func @toy_disc_kernel(%arg0: memref<2x108xf32, #tpu.memory_space<vmem>>, %arg1: memref<108x144xf32, #tpu.memory_space<vmem>>, %arg2: memref<1x4xf32, #tpu.memory_space<vmem>>, %arg3: memref<1x4xf32, #tpu.memory_space<vmem>>, %arg4: memref<144x144xf32, #tpu.memory_space<vmem>>, %arg5: memref<1x4xf32, #tpu.memory_space<vmem>>, %arg6: memref<1x4xf32, #tpu.memory_space<vmem>>, %arg7: memref<144x4xf32, #tpu.memory_space<vmem>>, %arg8: memref<4x144xf32, #tpu.memory_space<vmem>>, %arg9: memref<144x1xf32, #tpu.memory_space<vmem>>, %arg10: memref<1x1xf32, #tpu.memory_space<vmem>>, %arg11: memref<2x1xf32, #tpu.memory_space<vmem>>) attributes {dimension_semantics = [], scalar_prefetch = 0 : i64, scratch_operands = 0 : i64, tpu.core_type = #tpu.core_type<tc>} {
    %c0 = arith.constant 0 : index
    %c0_0 = arith.constant 0 : index
    %0 = vector.load %arg0[%c0, %c0_0] : memref<2x108xf32, #tpu.memory_space<vmem>>, vector<2x108xf32>
    %c0_1 = arith.constant 0 : index
    %c0_2 = arith.constant 0 : index
    %1 = vector.load %arg1[%c0_1, %c0_2] : memref<108x144xf32, #tpu.memory_space<vmem>>, vector<108x144xf32>
    %cst = arith.constant dense<0.000000e+00> : vector<2x144xf32>
    %2 = tpu.matmul %0, %1, %cst {dimension_numbers = #tpu.dot_dimension_numbers<[1], [0], [0], [1], [0, 0, 1, 1], [], []>} : vector<2x108xf32>, vector<108x144xf32>, vector<2x144xf32> -> vector<2x144xf32>
    %c0_3 = arith.constant 0 : index
    %c0_4 = arith.constant 0 : index
    %3 = vector.load %arg2[%c0_3, %c0_4] : memref<1x4xf32, #tpu.memory_space<vmem>>, vector<1x4xf32>
    %c0_5 = arith.constant 0 : index
    %c0_6 = arith.constant 0 : index
    %4 = vector.load %arg3[%c0_5, %c0_6] : memref<1x4xf32, #tpu.memory_space<vmem>>, vector<1x4xf32>
    %cst_7 = arith.constant dense<0.000000e+00> : vector<144xf32>
    %5 = vector.multi_reduction <add>, %2, %cst_7 [0] : vector<2x144xf32> to vector<144xf32>
    %6 = vector.shape_cast %5 : vector<144xf32> to vector<1x144xf32>
    %7 = arith.mulf %2, %2 : vector<2x144xf32>
    %cst_8 = arith.constant dense<0.000000e+00> : vector<144xf32>
    %8 = vector.multi_reduction <add>, %7, %cst_8 [0] : vector<2x144xf32> to vector<144xf32>
    %9 = vector.shape_cast %8 : vector<144xf32> to vector<1x144xf32>
    %c0_9 = arith.constant 0 : index
    %c0_10 = arith.constant 0 : index
    %10 = vector.load %arg7[%c0_9, %c0_10] : memref<144x4xf32, #tpu.memory_space<vmem>>, vector<144x4xf32>
    %cst_11 = arith.constant dense<0.000000e+00> : vector<1x4xf32>
    %11 = tpu.matmul %6, %10, %cst_11 {dimension_numbers = #tpu.dot_dimension_numbers<[1], [0], [0], [1], [0, 0, 1, 1], [], []>} : vector<1x144xf32>, vector<144x4xf32>, vector<1x4xf32> -> vector<1x4xf32>
    %c0_12 = arith.constant 0 : index
    %c0_13 = arith.constant 0 : index
    %12 = vector.load %arg7[%c0_12, %c0_13] : memref<144x4xf32, #tpu.memory_space<vmem>>, vector<144x4xf32>
    %cst_14 = arith.constant dense<0.000000e+00> : vector<1x4xf32>
    %13 = tpu.matmul %9, %12, %cst_14 {dimension_numbers = #tpu.dot_dimension_numbers<[1], [0], [0], [1], [0, 0, 1, 1], [], []>} : vector<1x144xf32>, vector<144x4xf32>, vector<1x4xf32> -> vector<1x4xf32>
    %cst_15 = arith.constant 0.013888889 : f32
    %14 = vector.broadcast %cst_15 : f32 to vector<1x4xf32>
    %15 = arith.mulf %11, %14 : vector<1x4xf32>
    %cst_16 = arith.constant 0.013888889 : f32
    %16 = vector.broadcast %cst_16 : f32 to vector<1x4xf32>
    %17 = arith.mulf %13, %16 : vector<1x4xf32>
    %18 = arith.mulf %15, %15 : vector<1x4xf32>
    %19 = arith.subf %17, %18 : vector<1x4xf32>
    %cst_17 = arith.constant 9.99999974E-6 : f32
    %20 = vector.broadcast %cst_17 : f32 to vector<1x4xf32>
    %21 = arith.addf %19, %20 : vector<1x4xf32>
    %22 = math.rsqrt %21 : vector<1x4xf32>
    %23 = arith.mulf %3, %22 : vector<1x4xf32>
    %24 = arith.mulf %15, %23 : vector<1x4xf32>
    %25 = arith.subf %4, %24 : vector<1x4xf32>
    %c0_18 = arith.constant 0 : index
    %c0_19 = arith.constant 0 : index
    %26 = vector.load %arg8[%c0_18, %c0_19] : memref<4x144xf32, #tpu.memory_space<vmem>>, vector<4x144xf32>
    %cst_20 = arith.constant dense<0.000000e+00> : vector<1x144xf32>
    %27 = tpu.matmul %23, %26, %cst_20 {dimension_numbers = #tpu.dot_dimension_numbers<[1], [0], [0], [1], [0, 0, 1, 1], [], []>} : vector<1x4xf32>, vector<4x144xf32>, vector<1x144xf32> -> vector<1x144xf32>
    %c0_21 = arith.constant 0 : index
    %c0_22 = arith.constant 0 : index
    %28 = vector.load %arg8[%c0_21, %c0_22] : memref<4x144xf32, #tpu.memory_space<vmem>>, vector<4x144xf32>
    %cst_23 = arith.constant dense<0.000000e+00> : vector<1x144xf32>
    %29 = tpu.matmul %25, %28, %cst_23 {dimension_numbers = #tpu.dot_dimension_numbers<[1], [0], [0], [1], [0, 0, 1, 1], [], []>} : vector<1x4xf32>, vector<4x144xf32>, vector<1x144xf32> -> vector<1x144xf32>
    %30 = vector.broadcast %27 : vector<1x144xf32> to vector<2x144xf32>
    %31 = arith.mulf %2, %30 : vector<2x144xf32>
    %32 = vector.broadcast %29 : vector<1x144xf32> to vector<2x144xf32>
    %33 = arith.addf %31, %32 : vector<2x144xf32>
    %cst_24 = arith.constant 0.000000e+00 : f32
    %34 = vector.broadcast %cst_24 : f32 to vector<2x144xf32>
    %35 = arith.cmpf oge, %33, %34 : vector<2x144xf32>
    %cst_25 = arith.constant 2.000000e-01 : f32
    %36 = vector.broadcast %cst_25 : f32 to vector<2x144xf32>
    %37 = arith.mulf %36, %33 : vector<2x144xf32>
    %38 = arith.select %35, %33, %37 : vector<2x144xi1>, vector<2x144xf32>
    %c0_26 = arith.constant 0 : index
    %c0_27 = arith.constant 0 : index
    %39 = vector.load %arg4[%c0_26, %c0_27] : memref<144x144xf32, #tpu.memory_space<vmem>>, vector<144x144xf32>
    %cst_28 = arith.constant dense<0.000000e+00> : vector<2x144xf32>
    %40 = tpu.matmul %38, %39, %cst_28 {dimension_numbers = #tpu.dot_dimension_numbers<[1], [0], [0], [1], [0, 0, 1, 1], [], []>} : vector<2x144xf32>, vector<144x144xf32>, vector<2x144xf32> -> vector<2x144xf32>
    %c0_29 = arith.constant 0 : index
    %c0_30 = arith.constant 0 : index
    %41 = vector.load %arg5[%c0_29, %c0_30] : memref<1x4xf32, #tpu.memory_space<vmem>>, vector<1x4xf32>
    %c0_31 = arith.constant 0 : index
    %c0_32 = arith.constant 0 : index
    %42 = vector.load %arg6[%c0_31, %c0_32] : memref<1x4xf32, #tpu.memory_space<vmem>>, vector<1x4xf32>
    %cst_33 = arith.constant dense<0.000000e+00> : vector<144xf32>
    %43 = vector.multi_reduction <add>, %40, %cst_33 [0] : vector<2x144xf32> to vector<144xf32>
    %44 = vector.shape_cast %43 : vector<144xf32> to vector<1x144xf32>
    %45 = arith.mulf %40, %40 : vector<2x144xf32>
    %cst_34 = arith.constant dense<0.000000e+00> : vector<144xf32>
    %46 = vector.multi_reduction <add>, %45, %cst_34 [0] : vector<2x144xf32> to vector<144xf32>
    %47 = vector.shape_cast %46 : vector<144xf32> to vector<1x144xf32>
    %c0_35 = arith.constant 0 : index
    %c0_36 = arith.constant 0 : index
    %48 = vector.load %arg7[%c0_35, %c0_36] : memref<144x4xf32, #tpu.memory_space<vmem>>, vector<144x4xf32>
    %cst_37 = arith.constant dense<0.000000e+00> : vector<1x4xf32>
    %49 = tpu.matmul %44, %48, %cst_37 {dimension_numbers = #tpu.dot_dimension_numbers<[1], [0], [0], [1], [0, 0, 1, 1], [], []>} : vector<1x144xf32>, vector<144x4xf32>, vector<1x4xf32> -> vector<1x4xf32>
    %c0_38 = arith.constant 0 : index
    %c0_39 = arith.constant 0 : index
    %50 = vector.load %arg7[%c0_38, %c0_39] : memref<144x4xf32, #tpu.memory_space<vmem>>, vector<144x4xf32>
    %cst_40 = arith.constant dense<0.000000e+00> : vector<1x4xf32>
    %51 = tpu.matmul %47, %50, %cst_40 {dimension_numbers = #tpu.dot_dimension_numbers<[1], [0], [0], [1], [0, 0, 1, 1], [], []>} : vector<1x144xf32>, vector<144x4xf32>, vector<1x4xf32> -> vector<1x4xf32>
    %cst_41 = arith.constant 0.013888889 : f32
    %52 = vector.broadcast %cst_41 : f32 to vector<1x4xf32>
    %53 = arith.mulf %49, %52 : vector<1x4xf32>
    %cst_42 = arith.constant 0.013888889 : f32
    %54 = vector.broadcast %cst_42 : f32 to vector<1x4xf32>
    %55 = arith.mulf %51, %54 : vector<1x4xf32>
    %56 = arith.mulf %53, %53 : vector<1x4xf32>
    %57 = arith.subf %55, %56 : vector<1x4xf32>
    %cst_43 = arith.constant 9.99999974E-6 : f32
    %58 = vector.broadcast %cst_43 : f32 to vector<1x4xf32>
    %59 = arith.addf %57, %58 : vector<1x4xf32>
    %60 = math.rsqrt %59 : vector<1x4xf32>
    %61 = arith.mulf %41, %60 : vector<1x4xf32>
    %62 = arith.mulf %53, %61 : vector<1x4xf32>
    %63 = arith.subf %42, %62 : vector<1x4xf32>
    %c0_44 = arith.constant 0 : index
    %c0_45 = arith.constant 0 : index
    %64 = vector.load %arg8[%c0_44, %c0_45] : memref<4x144xf32, #tpu.memory_space<vmem>>, vector<4x144xf32>
    %cst_46 = arith.constant dense<0.000000e+00> : vector<1x144xf32>
    %65 = tpu.matmul %61, %64, %cst_46 {dimension_numbers = #tpu.dot_dimension_numbers<[1], [0], [0], [1], [0, 0, 1, 1], [], []>} : vector<1x4xf32>, vector<4x144xf32>, vector<1x144xf32> -> vector<1x144xf32>
    %c0_47 = arith.constant 0 : index
    %c0_48 = arith.constant 0 : index
    %66 = vector.load %arg8[%c0_47, %c0_48] : memref<4x144xf32, #tpu.memory_space<vmem>>, vector<4x144xf32>
    %cst_49 = arith.constant dense<0.000000e+00> : vector<1x144xf32>
    %67 = tpu.matmul %63, %66, %cst_49 {dimension_numbers = #tpu.dot_dimension_numbers<[1], [0], [0], [1], [0, 0, 1, 1], [], []>} : vector<1x4xf32>, vector<4x144xf32>, vector<1x144xf32> -> vector<1x144xf32>
    %68 = vector.broadcast %65 : vector<1x144xf32> to vector<2x144xf32>
    %69 = arith.mulf %40, %68 : vector<2x144xf32>
    %70 = vector.broadcast %67 : vector<1x144xf32> to vector<2x144xf32>
    %71 = arith.addf %69, %70 : vector<2x144xf32>
    %cst_50 = arith.constant 0.000000e+00 : f32
    %72 = vector.broadcast %cst_50 : f32 to vector<2x144xf32>
    %73 = arith.cmpf oge, %71, %72 : vector<2x144xf32>
    %cst_51 = arith.constant 2.000000e-01 : f32
    %74 = vector.broadcast %cst_51 : f32 to vector<2x144xf32>
    %75 = arith.mulf %74, %71 : vector<2x144xf32>
    %76 = arith.select %73, %71, %75 : vector<2x144xi1>, vector<2x144xf32>
    %c0_52 = arith.constant 0 : index
    %c0_53 = arith.constant 0 : index
    %77 = vector.load %arg9[%c0_52, %c0_53] : memref<144x1xf32, #tpu.memory_space<vmem>>, vector<144x1xf32>
    %cst_54 = arith.constant dense<0.000000e+00> : vector<2x1xf32>
    %78 = tpu.matmul %76, %77, %cst_54 {dimension_numbers = #tpu.dot_dimension_numbers<[1], [0], [0], [1], [0, 0, 1, 1], [], []>} : vector<2x144xf32>, vector<144x1xf32>, vector<2x1xf32> -> vector<2x1xf32>
    %c0_55 = arith.constant 0 : index
    %c0_56 = arith.constant 0 : index
    %79 = vector.load %arg10[%c0_55, %c0_56] : memref<1x1xf32, #tpu.memory_space<vmem>>, vector<1x1xf32>
    %80 = vector.broadcast %79 : vector<1x1xf32> to vector<2x1xf32>
    %81 = arith.addf %78, %80 : vector<2x1xf32>
    %82 = arith.negf %81 : vector<2x1xf32>
    %83 = math.exp %82 : vector<2x1xf32>
    %cst_57 = arith.constant 1.000000e+00 : f32
    %84 = vector.broadcast %cst_57 : f32 to vector<2x1xf32>
    %85 = arith.addf %84, %83 : vector<2x1xf32>
    %86 = arith.divf %84, %85 : vector<2x1xf32>
    %c0_58 = arith.constant 0 : index
    %c0_59 = arith.constant 0 : index
    %87 = vector.load %arg11[%c0_58, %c0_59] : memref<2x1xf32, #tpu.memory_space<vmem>>, vector<2x1xf32>
    tpu.vector_store %arg11[%c0_58, %c0_59], %86 {strides = array<i32>} : memref<2x1xf32, #tpu.memory_space<vmem>>, vector<2x1xf32>,
    return
  }
}

</mosaic_0001>

<bundles_post_ra>
// kernel: tpu_custom_call.1
= control target key start
LH: loop header
LB: loop body
LE: loop exit
PB: predicated region body
PF: predicated region fallthrough
CT: control target
= control target key end

     0   :  { %v1358_v3 = vmov 0.0   ;;  %v1359_v8 = vmov 0.0|0.0   ;;  %vm73_vm0 = vcmask 1043456   ;;  %vm1360_vm1 = vmmov 1   ;;  %s1924_s1 = inlined_call_operand.vmem [shape: f32[108,144], index: 1, kind: input, shape index: {}]   ;;  %s1925_s7 = inlined_call_operand.vmem [shape: f32[144,4], index: 7, kind: input, shape index: {}]   ;;  %s1926_s0 = inlined_call_operand.vmem [shape: f32[2,108], index: 0, kind: input, shape index: {}]   ;;  %s1927_s8 = inlined_call_operand.vmem [shape: f32[4,144], index: 8, kind: input, shape index: {}]   ;;  %s1928_s2 = inlined_call_operand.vmem [shape: f32[1,4], index: 2, kind: input, shape index: {}]   ;;  %s1929_s4 = inlined_call_operand.vmem [shape: f32[144,144], index: 4, kind: input, shape index: {}]   ;;  %s1930_s3 = inlined_call_operand.vmem [shape: f32[1,4], index: 3, kind: input, shape index: {}]   ;;  %s1931_s9 = inlined_call_operand.vmem [shape: f32[144,1], index: 9, kind: input, shape index: {}]   ;;  %s1932_s5 = inlined_call_operand.vmem [shape: f32[1,4], index: 5, kind: input, shape index: {}]   ;;  %s1933_s6 = inlined_call_operand.vmem [shape: f32[1,4], index: 6, kind: input, shape index: {}]   ;;  %s1934_s10 = inlined_call_operand.<no memory space> [shape: f32[1,1], index: 10, kind: input, shape index: {}]   ;;  %s1935_s11 = inlined_call_operand.vmem [shape: f32[2,1], index: 11, kind: output, shape index: {}]  }
   0x1   :  { %v42_v0 = vld [vmem:[%s1924_s1 + $0x8] sm:$0xff]  ;;  %v44_v1 = vld [vmem:[%s1924_s1 + $0x18] sm:$0xff]  ;;  %v41_v2 = vld [vmem:[%s1924_s1] sm:$0xff]  ;;  %144 = vmatprep.mubr.f32.mxu0 %v1358_v3  ;;  %1175 = vmatprep.subr.bf16.mxu1 %v1359_v8  ;;  %vm69_vm3 = vcmask 883712   ;;  %vm153_vm4 = vcmask 1041408   ;;  %vm161_vm5 = vcmask 123904  }
   0x2   :  { %v1145_v4 = vpack.c.bf16 %v44_v1, %v42_v0  ;;  %v43_v5 = vld [vmem:[%s1924_s1 + $0x10] sm:$0xff]  ;;  %v46_v6 = vld [vmem:[%s1924_s1 + $0x28] sm:$0xff]  ;;  %v48_v7 = vld [vmem:[%s1924_s1 + $0x38] sm:$0xff]  ;;  %vm203_vm6 = vcmask 130048   ;;  %vm362_vm7 = vcmask 31744   ;;  %vm1116_vm12 = vcmask 1024  }
   0x3   :  { %v1147_v9 = vpack.c.bf16 %v43_v5, %v41_v2  ;;  %v1149_v10 = vpack.c.bf16 %v48_v7, %v46_v6  ;;  %v45_v11 = vld [vmem:[%s1924_s1 + $0x20] sm:$0xff]  ;;  %v47_v12 = vld [vmem:[%s1924_s1 + $0x30] sm:$0xff]  ;;  %v50_v13 = vld [vmem:[%s1924_s1 + $0x48] sm:$0xff] }
   0x4   :  { %1146 = vmatprep.subr.bf16.mxu0 %v1145_v4  ;;  %v52_v14 = vld [vmem:[%s1924_s1 + $0x58] sm:$0xff]  ;;  %v1151_v15 = vpack.c.bf16 %v47_v12, %v45_v11  ;;  %v49_v17 = vld [vmem:[%s1924_s1 + $0x40] sm:$0xff]  ;;  %v51_v18 = vld [vmem:[%s1924_s1 + $0x50] sm:$0xff] }
   0x5   :  { %1148 = vmatpush1.bf16.msra.mxu0 %v1147_v9  ;;  %v1153_v16 = vpack.c.bf16 %v52_v14, %v50_v13  ;;  %v54_v19 = vld [vmem:[%s1924_s1 + $0x68] sm:$0xff]  ;;  %v56_v20 = vld [vmem:[%s1924_s1 + $0x78] sm:$0xff]  ;;  %v1155_v21 = vpack.c.bf16 %v51_v18, %v49_v17  ;;  %v53_v22 = vld [vmem:[%s1924_s1 + $0x60] sm:$0xff] }
   0x6   :  { %1150 = vmatprep.subr.bf16.mxu0 %v1149_v10  ;;  %v1157_v23 = vpack.c.bf16 %v56_v20, %v54_v19  ;;  %v55_v24 = vld [vmem:[%s1924_s1 + $0x70] sm:$0xff]  ;;  %v58_v25 = vld [vmem:[%s1924_s1 + $0x88] sm:$0xff]  ;;  %v60_v26 = vld [vmem:[%s1924_s1 + $0x98] sm:$0xff] }
   0x7   :  { %v185_v27 = vld [vmem:[%s1925_s7] sm:$0xff]  ;;  %v186_v28 = vld [vmem:[%s1925_s7 + $0x8] sm:$0xff]  ;;  %v187_v29 = vld [vmem:[%s1925_s7 + $0x10] sm:$0xff]  ;;  %v1159_v32 = vpack.c.bf16 %v55_v24, %v53_v22  ;;  %v1161_v33 = vpack.c.bf16 %v60_v26, %v58_v25 }
   0x8   :  { %v1486_v30 = vpack.c.bf16 %v186_v28, %v185_v27  ;;  %v188_v31 = vld [vmem:[%s1925_s7 + $0x18] sm:$0xff]  ;;  %v57_v34 = vld [vmem:[%s1924_s1 + $0x80] sm:$0xff]  ;;  %v59_v35 = vld [vmem:[%s1924_s1 + $0x90] sm:$0xff] }
   0x9   :  { %1152 = vmatpush1.bf16.msra.mxu0 %v1151_v15  ;;  %v62_v36 = vld [vmem:[%s1924_s1 + $0xa8] sm:$0xff]  ;;  %v1501_v37 = vpack.c.bf16 %v188_v31, %v187_v29  ;;  %v64_v38 = vld [vmem:[%s1924_s1 + $0xb8] sm:$0xff]  ;;  %v189_v39 = vld [vmem:[%s1925_s7 + $0x20] sm:$0xff]  ;;  %v1163_v41 = vpack.c.bf16 %v59_v35, %v57_v34 }
   0xa   :  { %1154 = vmatprep.subr.bf16.mxu0 %v1153_v16  ;;  %1177 = vmatpush1.bf16.msra.mxu1 %v1486_v30  ;;  %v190_v40 = vld [vmem:[%s1925_s7 + $0x28] sm:$0xff]  ;;  %v1165_v42 = vpack.c.bf16 %v64_v38, %v62_v36  ;;  %v61_v43 = vld [vmem:[%s1924_s1 + $0xa0] sm:$0xff]  ;;  %v63_v44 = vld [vmem:[%s1924_s1 + $0xb0] sm:$0xff] }
   0xb   :  { %1178 = vmatprep.subr.bf16.mxu1 %v1359_v8  ;;  %v66_v45 = vld [vmem:[%s1924_s1 + $0xc8] sm:$0xff]  ;;  %v1523_v46 = vpack.c.bf16 %v190_v40, %v189_v39  ;;  %v68_v47 = vld [vmem:[%s1924_s1 + $0xd8] sm:$0xf]  ;;  %v191_v48 = vld [vmem:[%s1925_s7 + $0x30] sm:$0xff]  ;;  %v1167_v50 = vpack.c.bf16 %v63_v44, %v61_v43 }
   0xc   :  { %v192_v49 = vld [vmem:[%s1925_s7 + $0x38] sm:$0xff]  ;;  %v1169_v51 = vpack.c.bf16 %v68_v47, %v66_v45  ;;  %v65_v52 = vld [vmem:[%s1924_s1 + $0xc0] sm:$0xff]  ;;  %v67_v53 = vld [vmem:[%s1924_s1 + $0xd0] sm:$0xf] }
   0xd   :  { %1156 = vmatpush1.bf16.msra.mxu0 %v1155_v21  ;;  %v1542_v54 = vpack.c.bf16 %v192_v49, %v191_v48  ;;  %vm1170_vm2 = vmpackc.low %vm73_vm0, %vm1360_vm1  ;;  %v193_v55 = vld [vmem:[%s1925_s7 + $0x40] sm:$0xff]  ;;  %v194_v56 = vld [vmem:[%s1925_s7 + $0x48] sm:$0xff]  ;;  %v1172_v57 = vpack.c.bf16 %v67_v53, %v65_v52 }
   0xe   :  { %1158 = vmatprep.subr.bf16.mxu0 %v1157_v23  ;;  %1180 = vmatpush1.bf16.msra.mxu1 %v1501_v37  ;;  %v1553_v58 = vpack.c.bf16 %v194_v56, %v193_v55  ;;  %v40_v59 = vld [vmem:[%s1926_s0] sm:$0x3]  ;;  %v195_v60 = vld [vmem:[%s1925_s7 + $0x50] sm:$0xff]  ;;  %v196_v61 = vld [vmem:[%s1925_s7 + $0x58] sm:$0xff] }
   0xf   :  { %1181 = vmatprep.subr.bf16.mxu1 %v1359_v8  ;;  %v1578_v62 = vpack.c.bf16 %v196_v61, %v195_v60  ;;  %v197_v63 = vld [vmem:[%s1925_s7 + $0x60] sm:$0xff]  ;;  %v198_v0 = vld [vmem:[%s1925_s7 + $0x68] sm:$0xff]  ;;  %v199_v2 = vld [vmem:[%s1925_s7 + $0x70] sm:$0xff] }
  0x10   :  { %v1590_v1 = vpack.c.bf16 %v198_v0, %v197_v63  ;;  %v200_v4 = vld [vmem:[%s1925_s7 + $0x78] sm:$0xff]  ;;  %v201_v6 = vld [vmem:[%s1925_s7 + $0x80] sm:$0xff]  ;;  %v202_v7 = vld [vmem:[%s1925_s7 + $0x88] sm:$0xff] }
  0x11   :  { %1160 = vmatpush1.bf16.msra.mxu0 %v1159_v32  ;;  %v1602_v5 = vpack.c.bf16 %v200_v4, %v199_v2  ;;  %v1614_v9 = vpack.c.bf16 %v202_v7, %v201_v6  ;;  %v1657_v44 = vld [vmem:[%s1927_s8] sm:$0xff]  ;;  %v544_v60 = vld [vmem:[%s1929_s4 + $0x18] sm:$0xff]  ;;  %v543_v4 = vld [vmem:[%s1929_s4 + $0x10] sm:$0xff] }
  0x12   :  { %1162 = vmatprep.subr.bf16.mxu0 %v1161_v33  ;;  %1183 = vmatpush1.bf16.msra.mxu1 %v1523_v46  ;;  %v1661_v45 = vcombine.high %v1657_v44, %v1657_v44  ;;  %v541_v2 = vld [vmem:[%s1929_s4] sm:$0xff]  ;;  %v546_v7 = vld [vmem:[%s1929_s4 + $0x28] sm:$0xff] }
  0x13   :  { %1184 = vmatprep.subr.bf16.mxu1 %v1359_v8  ;;  %v152_v6 = vld [vmem:[%s1930_s3] sm:$0x1] }
  0x15   :  { %1164 = vmatpush1.bf16.msra.mxu0 %v1163_v41 }
  0x16   :  { %1166 = vmatprep.subr.bf16.mxu0 %v1165_v42  ;;  %1186 = vmatpush1.bf16.msra.mxu1 %v1542_v54 }
  0x17   :  { %1187 = vmatprep.subr.bf16.mxu1 %v1359_v8 }
  0x19   :  { %1168 = vmatpush1.bf16.msra.mxu0 %v1167_v50 }
  0x1a   :  { %1171 = vmatprep.subr.msk.bf16.mxu0 %vm1170_vm2, %v1169_v51  ;;  %1189 = vmatpush1.bf16.msra.mxu1 %v1553_v58 }
  0x1b   :  { %1190 = vmatprep.subr.bf16.mxu1 %v1359_v8 }
  0x1d   :  { %1174 = vmatpush1.bf16.msk.msra.mxu0 %vm1170_vm2, %v1172_v57  ;;  %v151_v57 = vld [vmem:[%s1928_s2] sm:$0x1] }
  0x1e   :  { %1202 = vmatprep.subr.bf16.mxu0 %v1359_v8  ;;  %1192 = vmatpush1.bf16.msra.mxu1 %v1578_v62 }
  0x1f   :  { %1193 = vmatprep.subr.bf16.mxu1 %v1359_v8 }
  0x20   :  { %1124 = vmatmul.mubr.msk.f32.vlgmr.msra.gmra.mrb[0].mxu0 %vm69_vm3, %v40_v59  ;;  %v542_v59 = vld [vmem:[%s1929_s4 + $0x8] sm:$0xff] }
  0x21   :  { %1204 = vmatpush1.bf16.msra.mxu0 %v1486_v30  ;;  %v1229_v0 = vpack.c.bf16 %v544_v60, %v542_v59  ;;  %v569_v60 = vld [vmem:[%s1929_s4 + $0xe0] sm:$0xff] }
  0x22   :  { %1205 = vmatprep.subr.bf16.mxu0 %v1359_v8  ;;  %1195 = vmatpush1.bf16.msra.mxu1 %v1590_v1 }
  0x23   :  { %1196 = vmatprep.subr.bf16.mxu1 %v1359_v8 }
  0x25   :  { %1207 = vmatpush1.bf16.msra.mxu0 %v1501_v37 }
  0x26   :  { %1208 = vmatprep.subr.bf16.mxu0 %v1359_v8  ;;  %1198 = vmatpush1.bf16.msra.mxu1 %v1602_v5 }
  0x27   :  { %1199 = vmatprep.subr.bf16.mxu1 %v1359_v8 }
  0x29   :  { %1210 = vmatpush1.bf16.msra.mxu0 %v1523_v46 }
  0x2a   :  { %1211 = vmatprep.subr.bf16.mxu0 %v1359_v8  ;;  %1201 = vmatpush1.bf16.msra.mxu1 %v1614_v9 }
  0x2b   :  { %1127 = vmatprep.subr.msk.mxu1 %vm73_vm0, %v1661_v45 }
  0x2d   :  { %1213 = vmatpush1.bf16.msra.mxu0 %v1542_v54 }
  0x2e   :  { %1214 = vmatprep.subr.bf16.mxu0 %v1359_v8 }
  0x31   :  { %1216 = vmatpush1.bf16.msra.mxu0 %v1553_v58 }
  0x32   :  { %1217 = vmatprep.subr.bf16.mxu0 %v1359_v8 }
  0x35   :  { %1219 = vmatpush1.bf16.msra.mxu0 %v1578_v62 }
  0x36   :  { %1220 = vmatprep.subr.bf16.mxu0 %v1359_v8 }
  0x39   :  { %1222 = vmatpush1.bf16.msra.mxu0 %v1590_v1 }
  0x3a   :  { %1223 = vmatprep.subr.bf16.mxu0 %v1359_v8 }
  0x3d   :  { %1225 = vmatpush1.bf16.msra.mxu0 %v1602_v5 }
  0x3e   :  { %1226 = vmatprep.subr.bf16.mxu0 %v1359_v8 }
  0x41   :  { %1228 = vmatpush1.bf16.msra.mxu0 %v1614_v9 }
  0x42   :  { %1265 = vmatprep.subr.bf16.mxu0 %v1359_v8 }
  0xf3   :  { %v1619_v10 = vpop.f32.mrb[0].mxu0 }
  0xf4   :  { %v154_v11 = vsel %vm153_vm4, %v1619_v10, 0.0  ;;  %v169_v12 = vmul.f32 %v1619_v10, %v1619_v10  ;;  %v1625_v13 = vpop.f32.mrb[1].mxu0 }
  0xf5   :  { %v155_v14 = vrot.slane %v154_v11, 4  ;;  %v162_v15 = vsel %vm161_vm5, %v1625_v13, 0.0  ;;  %v170_v16 = vmul.f32 %v1625_v13, %v1625_v13 }
  0xf6   :  { %v171_v17 = vsel %vm153_vm4, %v169_v12, 0.0  ;;  %v163_v18 = vrot.slane %v162_v15, 4 }
  0xf7   :  { %v156_v19 = vadd.f32 %v155_v14, %v154_v11  ;;  %v172_v20 = vrot.slane %v171_v17, 4  ;;  %v178_v21 = vsel %vm161_vm5, %v170_v16, 0.0  ;;  %v548_v11 = vld [vmem:[%s1929_s4 + $0x38] sm:$0xff]  ;;  %v1231_v14 = vpack.c.bf16 %v543_v4, %v541_v2 }
  0xf8   :  { %v164_v22 = vadd.f32 %v163_v18, %v162_v15  ;;  %v179_v23 = vrot.slane %v178_v21, 4  ;;  %v1233_v16 = vpack.c.bf16 %v548_v11, %v546_v7  ;;  %v547_v18 = vld [vmem:[%s1929_s4 + $0x30] sm:$0xff]  ;;  %v576_v2 = vld [vmem:[%s1929_s4 + $0x118] sm:$0xff] }
  0xf9   :  { %v157_v24 = vrot.slane %v156_v19, 2  ;;  %v173_v25 = vadd.f32 %v172_v20, %v171_v17  ;;  %v545_v17 = vld [vmem:[%s1929_s4 + $0x20] sm:$0xff]  ;;  %v552_v20 = vld [vmem:[%s1929_s4 + $0x58] sm:$0xff]  ;;  %v575_v7 = vld [vmem:[%s1929_s4 + $0x110] sm:$0xff] }
  0xfa   :  { %v180_v26 = vadd.f32 %v179_v23, %v178_v21  ;;  %v165_v27 = vrot.slane %v164_v22, 2  ;;  %v1235_v21 = vpack.c.bf16 %v547_v18, %v545_v17  ;;  %v549_v23 = vld [vmem:[%s1929_s4 + $0x40] sm:$0xff] }
  0xfb   :  { %v174_v28 = vrot.slane %v173_v25, 2  ;;  %v158_v29 = vadd.f32 %v157_v24, %v156_v19  ;;  %v550_v19 = vld [vmem:[%s1929_s4 + $0x48] sm:$0xff]  ;;  %v551_v24 = vld [vmem:[%s1929_s4 + $0x50] sm:$0xff] }
  0xfc   :  { %v181_v31 = vrot.slane %v180_v26, 2  ;;  %v166_v32 = vadd.f32 %v165_v27, %v164_v22  ;;  %v1237_v22 = vpack.c.bf16 %v552_v20, %v550_v19  ;;  %v1239_v27 = vpack.c.bf16 %v551_v24, %v549_v23 }
  0xfd   :  { %v175_v33 = vadd.f32 %v174_v28, %v173_v25  ;;  %v159_v34 = vrot.slane %v158_v29, 1  ;;  %v554_v25 = vld [vmem:[%s1929_s4 + $0x68] sm:$0xff] }
  0xfe   :  { %v182_v35 = vadd.f32 %v181_v31, %v180_v26  ;;  %v167_v36 = vrot.slane %v166_v32, 1  ;;  %v556_v26 = vld [vmem:[%s1929_s4 + $0x78] sm:$0xff]  ;;  %v555_v31 = vld [vmem:[%s1929_s4 + $0x70] sm:$0xff] }
  0xff   :  { %v176_v38 = vrot.slane %v175_v33, 1  ;;  %v160_v41 = vadd.f32 %v159_v34, %v158_v29  ;;  %v1241_v28 = vpack.c.bf16 %v556_v26, %v554_v25  ;;  %v553_v29 = vld [vmem:[%s1929_s4 + $0x60] sm:$0xff] }
 0x100   :  { %v168_v39 = vadd.f32 %v167_v36, %v166_v32  ;;  %v183_v40 = vrot.slane %v182_v35, 1  ;;  %v558_v32 = vld [vmem:[%s1929_s4 + $0x88] sm:$0xff]  ;;  %v1243_v34 = vpack.c.bf16 %v555_v31, %v553_v29  ;;  %v557_v36 = vld [vmem:[%s1929_s4 + $0x80] sm:$0xff] }
 0x101   :  { %v177_v43 = vadd.f32 %v176_v38, %v175_v33  ;;  %v560_v33 = vld [vmem:[%s1929_s4 + $0x98] sm:$0xff]  ;;  %v559_v38 = vld [vmem:[%s1929_s4 + $0x90] sm:$0xff] }
 0x102   :  { %1125 = vmatprep.mubr.msk.f32.mxu1 %vm203_vm6, %v168_v39  ;;  %v184_v42 = vadd.f32 %v183_v40, %v182_v35  ;;  %v1245_v35 = vpack.c.bf16 %v560_v33, %v558_v32  ;;  %v562_v39 = vld [vmem:[%s1929_s4 + $0xa8] sm:$0xff]  ;;  %v564_v40 = vld [vmem:[%s1929_s4 + $0xb8] sm:$0xff] }
 0x103   :  { %272 = vmatmul.mubr.f32.vlgmr.msra.gmra.mrb[0].mxu1 %v160_v41  ;;  %v1247_v41 = vpack.c.bf16 %v559_v38, %v557_v36 }
 0x104   :  { %1126 = vmatprep.mubr.msk.f32.mxu0 %vm203_vm6, %v184_v42  ;;  %434 = vmatprep.mubr.f32.mxu1 %v1358_v3  ;;  %v1249_v42 = vpack.c.bf16 %v564_v40, %v562_v39 }
 0x105   :  { %345 = vmatmul.mubr.f32.vlgmr.msra.gmra.mrb[2].mxu0 %v177_v43  ;;  %1128 = vmatpush1.msk.msra.mxu1 %vm73_vm0, %v1657_v44  ;;  %v561_v43 = vld [vmem:[%s1929_s4 + $0xa0] sm:$0xff] }
 0x106   :  { %1267 = vmatpush1.bf16.msra.mxu0 %v1486_v30  ;;  %1130 = vmatprep.subr.msk.mxu1 %vm73_vm0, %v1661_v45 }
 0x107   :  { %1268 = vmatprep.subr.bf16.mxu0 %v1359_v8 }
 0x10a   :  { %1270 = vmatpush1.bf16.msra.mxu0 %v1501_v37 }
 0x10b   :  { %1271 = vmatprep.subr.bf16.mxu0 %v1359_v8 }
 0x10e   :  { %1273 = vmatpush1.bf16.msra.mxu0 %v1523_v46 }
 0x10f   :  { %1274 = vmatprep.subr.bf16.mxu0 %v1359_v8 }
 0x112   :  { %1276 = vmatpush1.bf16.msra.mxu0 %v1542_v54 }
 0x113   :  { %1277 = vmatprep.subr.bf16.mxu0 %v1359_v8 }
 0x116   :  { %1279 = vmatpush1.bf16.msra.mxu0 %v1553_v58 }
 0x117   :  { %1280 = vmatprep.subr.bf16.mxu0 %v1359_v8 }
 0x11a   :  { %1282 = vmatpush1.bf16.msra.mxu0 %v1578_v62 }
 0x11b   :  { %1283 = vmatprep.subr.bf16.mxu0 %v1359_v8 }
 0x11e   :  { %1285 = vmatpush1.bf16.msra.mxu0 %v1590_v1 }
 0x11f   :  { %1286 = vmatprep.subr.bf16.mxu0 %v1359_v8 }
 0x122   :  { %1288 = vmatpush1.bf16.msra.mxu0 %v1602_v5 }
 0x123   :  { %1289 = vmatprep.subr.bf16.mxu0 %v1359_v8 }
 0x126   :  { %1291 = vmatpush1.bf16.msra.mxu0 %v1614_v9 }
 0x127   :  { %1319 = vmatprep.subr.bf16.mxu0 %v1359_v8 }
 0x1d6   :  { %v273_v47 = vpop.f32.mrb[0].mxu1 }
 0x1d7   :  { %v350_v48 = vmul.f32 0.013888889, %v273_v47  ;;  %v275_v49 = vpop.f32.mrb[1].mxu1  ;;  %v563_v47 = vld [vmem:[%s1929_s4 + $0xb0] sm:$0xff] }
 0x1d8   :  { %v346_v50 = vpop.f32.mrb[2].mxu0  ;;  %v566_v49 = vld [vmem:[%s1929_s4 + $0xc8] sm:$0xff] }
 0x1d9   :  { %v352_v51 = vmul.f32 %v350_v48, %v350_v48  ;;  %v351_v52 = vmul.f32 0.013888889, %v346_v50  ;;  %v348_v53 = vpop.f32.mrb[3].mxu0  ;;  %v568_v50 = vld [vmem:[%s1929_s4 + $0xd8] sm:$0xff] }
 0x1da   :  { %v567_v53 = vld [vmem:[%s1929_s4 + $0xd0] sm:$0xff] }
 0x1db   :  { %v353_v55 = vsub.f32 %v351_v52, %v352_v51  ;;  %v1253_v51 = vpack.c.bf16 %v568_v50, %v566_v49  ;;  %v565_v52 = vld [vmem:[%s1929_s4 + $0xc0] sm:$0xff] }
 0x1dd   :  { %v354_v56 = vadd.f32 1e-05, %v353_v55  ;;  %v1255_v55 = vpack.c.bf16 %v567_v53, %v565_v52 }
 0x1df   :  { %1350 = vrsqrt.f32 %v354_v56  ;;  %v570_v56 = vld [vmem:[%s1929_s4 + $0xe8] sm:$0xff] }
 0x1e9   :  { %v1351_v61 = vpop.eup %1350 }
 0x1ea   :  { %v356_v63 = vmul.f32 %v1351_v61, %v151_v57  ;;  %v572_v57 = vld [vmem:[%s1929_s4 + $0xf8] sm:$0xff]  ;;  %v571_v61 = vld [vmem:[%s1929_s4 + $0xf0] sm:$0xff] }
 0x1eb   :  { %v1257_v59 = vpack.c.bf16 %v572_v57, %v570_v56 }
 0x1ec   :  { %1129 = vmatmul.mubr.msk.f32.vlgmr.msra.gmra.mrb[2].mxu1 %vm362_vm7, %v356_v63  ;;  %v357_v12 = vmul.f32 %v356_v63, %v350_v48  ;;  %v1251_v48 = vpack.c.bf16 %v563_v47, %v561_v43  ;;  %v1259_v63 = vpack.c.bf16 %v571_v61, %v569_v60  ;;  %v1012_v60 = vld [vmem:[%s1931_s9] sm:$0xff]  ;;  %v1013_v61 = vld [vmem:[%s1931_s9 + $0x8] sm:$0xff] }
 0x1ed   :  { %1131 = vmatpush1.msk.msra.mxu1 %vm73_vm0, %v1657_v44  ;;  %508 = vmatprep.mubr.f32.mxu1 %v1358_v3 }
 0x1ee   :  { %v358_v15 = vsub.f32 %v152_v6, %v357_v12  ;;  %1230 = vmatprep.subr.bf16.mxu1 %v1229_v0  ;;  %v574_v0 = vld [vmem:[%s1929_s4 + $0x108] sm:$0xff]  ;;  %v573_v6 = vld [vmem:[%s1929_s4 + $0x100] sm:$0xff]  ;;  %v515_v12 = vlaneseq }
 0x1ef   :  { %v1261_v4 = vpack.c.bf16 %v576_v2, %v574_v0  ;;  %v1263_v11 = vpack.c.bf16 %v575_v7, %v573_v6  ;;  %v1320_v0 = vpack.c.bf16 %v1013_v61, %v1012_v60  ;;  %v1015_v2 = vld [vmem:[%s1931_s9 + $0x18] sm:$0xff]  ;;  %v1017_v6 = vld [vmem:[%s1931_s9 + $0x28] sm:$0xff] }
 0x1f0   :  { %1132 = vmatmul.mubr.msk.f32.vlgmr.msra.gmra.mrb[4].mxu1 %vm362_vm7, %v358_v15 }
 0x1f1   :  { %1232 = vmatpush1.bf16.msra.mxu1 %v1231_v14  ;;  %v516_v14 = vshrl.u32 %v515_v12, 7  ;;  %v1019_v12 = vld [vmem:[%s1931_s9 + $0x38] sm:$0xff] }
 0x1f2   :  { %1234 = vmatprep.subr.bf16.mxu1 %v1233_v16 }
 0x1f3   :  { %v1789_v15 = vsub.s32 0, %v516_v14 }
 0x1f5   :  { %1236 = vmatpush1.bf16.msra.mxu1 %v1235_v21 }
 0x1f6   :  { %1238 = vmatprep.subr.bf16.mxu1 %v1237_v22 }
 0x1f9   :  { %1240 = vmatpush1.bf16.msra.mxu1 %v1239_v27 }
 0x1fa   :  { %1242 = vmatprep.subr.bf16.mxu1 %v1241_v28 }
 0x1fd   :  { %1244 = vmatpush1.bf16.msra.mxu1 %v1243_v34 }
 0x1fe   :  { %1246 = vmatprep.subr.bf16.mxu1 %v1245_v35 }
 0x201   :  { %1248 = vmatpush1.bf16.msra.mxu1 %v1247_v41 }
 0x202   :  { %1250 = vmatprep.subr.bf16.mxu1 %v1249_v42 }
 0x205   :  { %1252 = vmatpush1.bf16.msra.mxu1 %v1251_v48 }
 0x206   :  { %1254 = vmatprep.subr.bf16.mxu1 %v1253_v51 }
 0x209   :  { %1256 = vmatpush1.bf16.msra.mxu1 %v1255_v55 }
 0x20a   :  { %1258 = vmatprep.subr.bf16.mxu1 %v1257_v59 }
 0x20d   :  { %1260 = vmatpush1.bf16.msra.mxu1 %v1259_v63  ;;  %v1014_v63 = vld [vmem:[%s1931_s9 + $0x10] sm:$0xff] }
 0x20e   :  { %1262 = vmatprep.subr.bf16.mxu1 %v1261_v4  ;;  %v1323_v4 = vpack.c.bf16 %v1015_v2, %v1014_v63 }
 0x211   :  { %1264 = vmatpush1.bf16.msra.mxu1 %v1263_v11  ;;  %v1018_v11 = vld [vmem:[%s1931_s9 + $0x30] sm:$0xff] }
 0x212   :  { %1292 = vmatprep.subr.bf16.mxu1 %v1359_v8  ;;  %v1329_v14 = vpack.c.bf16 %v1019_v12, %v1018_v11 }
 0x2bf   :  { %v436_v16 = vpop.f32.mrb[2].mxu1 }
 0x2c0   :  { %v518_v17 = vrot.slane %v436_v16, %v1789_v15  ;;  %v438_v18 = vpop.f32.mrb[3].mxu1  ;;  %v1020_v16 = vld [vmem:[%s1931_s9 + $0x40] sm:$0xff] }
 0x2c1   :  { %v522_v19 = vrot.slane %v438_v18, %v1789_v15 }
 0x2c2   :  { %v523_v20 = vmul.f32 %v518_v17, %v1619_v10  ;;  %v1021_v17 = vld [vmem:[%s1931_s9 + $0x48] sm:$0xff] }
 0x2c3   :  { %v524_v21 = vmul.f32 %v522_v19, %v1625_v13  ;;  %v510_v22 = vpop.f32.mrb[4].mxu1  ;;  %v1332_v18 = vpack.c.bf16 %v1021_v17, %v1020_v16  ;;  %v1022_v19 = vld [vmem:[%s1931_s9 + $0x50] sm:$0xff] }
 0x2c4   :  { %v528_v23 = vrot.slane %v510_v22, %v1789_v15  ;;  %v512_v24 = vpop.f32.mrb[5].mxu1 }
 0x2c5   :  { %v532_v25 = vrot.slane %v512_v24, %v1789_v15 }
 0x2c6   :  { %v533_v26 = vadd.f32 %v528_v23, %v523_v20  ;;  %v1023_v20 = vld [vmem:[%s1931_s9 + $0x58] sm:$0xff] }
 0x2c7   :  { %v534_v27 = vadd.f32 %v532_v25, %v524_v21  ;;  %v1335_v21 = vpack.c.bf16 %v1023_v20, %v1022_v19 }
 0x2c8   :  { %v537_v28 = vmul.f32 0.2, %v533_v26  ;;  %vm535_vm9 = vcmp.ge.f32.partialorder %v533_v26, 0.0 }
 0x2c9   :  { %v538_v29 = vmul.f32 0.2, %v534_v27  ;;  %vm536_vm8 = vcmp.ge.f32.partialorder %v534_v27, 0.0 }
 0x2ca   :  { %v539_v32 = vsel %vm535_vm9, %v533_v26, %v537_v28 }
 0x2cb   :  { %v540_v31 = vsel %vm536_vm8, %v534_v27, %v538_v29 }
 0x2cc   :  { %1133 = vmatprep.mubr.msk.f32.mxu1 %vm203_vm6, %v540_v31 }
 0x2cd   :  { %645 = vmatmul.mubr.f32.vlgmr.msra.gmra.mrb[6].mxu1 %v539_v32  ;;  %v651_v32 = vld [vmem:[%s1932_s5] sm:$0x1] }
 0x2ce   :  { %1294 = vmatpush1.bf16.msra.mxu1 %v1486_v30 }
 0x2cf   :  { %1295 = vmatprep.subr.bf16.mxu1 %v1359_v8 }
 0x2d2   :  { %1297 = vmatpush1.bf16.msra.mxu1 %v1501_v37 }
 0x2d3   :  { %1298 = vmatprep.subr.bf16.mxu1 %v1359_v8 }
 0x2d6   :  { %1300 = vmatpush1.bf16.msra.mxu1 %v1523_v46 }
 0x2d7   :  { %1301 = vmatprep.subr.bf16.mxu1 %v1359_v8 }
 0x2da   :  { %1303 = vmatpush1.bf16.msra.mxu1 %v1542_v54 }
 0x2db   :  { %1304 = vmatprep.subr.bf16.mxu1 %v1359_v8 }
 0x2de   :  { %1306 = vmatpush1.bf16.msra.mxu1 %v1553_v58 }
 0x2df   :  { %1307 = vmatprep.subr.bf16.mxu1 %v1359_v8 }
 0x2e2   :  { %1309 = vmatpush1.bf16.msra.mxu1 %v1578_v62 }
 0x2e3   :  { %1310 = vmatprep.subr.bf16.mxu1 %v1359_v8 }
 0x2e6   :  { %1312 = vmatpush1.bf16.msra.mxu1 %v1590_v1 }
 0x2e7   :  { %1313 = vmatprep.subr.bf16.mxu1 %v1359_v8 }
 0x2ea   :  { %1315 = vmatpush1.bf16.msra.mxu1 %v1602_v5 }
 0x2eb   :  { %1316 = vmatprep.subr.bf16.mxu1 %v1359_v8 }
 0x2ee   :  { %1318 = vmatpush1.bf16.msra.mxu1 %v1614_v9 }
 0x2ef   :  { %1136 = vmatprep.subr.msk.mxu1 %vm73_vm0, %v1661_v45 }
 0x3a0   :  { %v1817_v30 = vpop.f32.mrb[6].mxu1 }
 0x3a1   :  { %v653_v37 = vsel %vm153_vm4, %v1817_v30, 0.0  ;;  %v667_v46 = vmul.f32 %v1817_v30, %v1817_v30  ;;  %v1823_v54 = vpop.f32.mrb[7].mxu1 }
 0x3a2   :  { %v654_v58 = vrot.slane %v653_v37, 4  ;;  %v660_v62 = vsel %vm161_vm5, %v1823_v54, 0.0  ;;  %v668_v1 = vmul.f32 %v1823_v54, %v1823_v54 }
 0x3a3   :  { %v669_v5 = vsel %vm153_vm4, %v667_v46, 0.0  ;;  %v661_v9 = vrot.slane %v660_v62, 4 }
 0x3a4   :  { %v655_v10 = vadd.f32 %v654_v58, %v653_v37  ;;  %v670_v13 = vrot.slane %v669_v5, 4  ;;  %v676_v33 = vsel %vm161_vm5, %v668_v1, 0.0  ;;  %v652_v58 = vld [vmem:[%s1933_s6] sm:$0x1] }
 0x3a5   :  { %v662_v34 = vadd.f32 %v661_v9, %v660_v62  ;;  %v677_v35 = vrot.slane %v676_v33, 4  ;;  %v1025_v9 = vld [vmem:[%s1931_s9 + $0x68] sm:$0xff] }
 0x3a6   :  { %v656_v36 = vrot.slane %v655_v10, 2  ;;  %v671_v38 = vadd.f32 %v670_v13, %v669_v5  ;;  %v1024_v5 = vld [vmem:[%s1931_s9 + $0x60] sm:$0xff] }
 0x3a7   :  { %v663_v39 = vrot.slane %v662_v34, 2  ;;  %v678_v40 = vadd.f32 %v677_v35, %v676_v33  ;;  %v1028_v33 = vld [vmem:[%s1931_s9 + $0x80] sm:$0xff] }
 0x3a8   :  { %v657_v41 = vadd.f32 %v656_v36, %v655_v10  ;;  %v672_v42 = vrot.slane %v671_v38, 2  ;;  %v1338_v10 = vpack.c.bf16 %v1025_v9, %v1024_v5  ;;  %v16_v36 = vstv %s1934_s10 }
 0x3a9   :  { %v664_v43 = vadd.f32 %v663_v39, %v662_v34  ;;  %v679_v47 = vrot.slane %v678_v40, 2  ;;  %v1029_v34 = vld [vmem:[%s1931_s9 + $0x88] sm:$0xff]  ;;  %17 = vst [vmem:[#allocation2] sm:$0x1] %v16_v36 }
 0x3aa   :  { %v658_v48 = vrot.slane %v657_v41, 1  ;;  %v673_v49 = vadd.f32 %v672_v42, %v671_v38  ;;  %v1344_v35 = vpack.c.bf16 %v1029_v34, %v1028_v33 }
 0x3ab   :  { %v665_v50 = vrot.slane %v664_v43, 1  ;;  %v680_v51 = vadd.f32 %v679_v47, %v678_v40 }
 0x3ac   :  { %v674_v52 = vrot.slane %v673_v49, 1  ;;  %v659_v56 = vadd.f32 %v658_v48, %v657_v41 }
 0x3ad   :  { %v666_v53 = vadd.f32 %v665_v50, %v664_v43  ;;  %v681_v55 = vrot.slane %v680_v51, 1 }
 0x3ae   :  { %v675_v59 = vadd.f32 %v674_v52, %v673_v49 }
 0x3af   :  { %1134 = vmatprep.mubr.msk.f32.mxu0 %vm203_vm6, %v666_v53  ;;  %v682_v57 = vadd.f32 %v681_v55, %v680_v51 }
 0x3b0   :  { %751 = vmatmul.mubr.f32.vlgmr.msra.gmra.mrb[4].mxu0 %v659_v56 }
 0x3b1   :  { %1135 = vmatprep.mubr.msk.f32.mxu1 %vm203_vm6, %v682_v57  ;;  %1321 = vmatpush1.bf16.msra.mxu0 %v1320_v0 }
 0x3b2   :  { %824 = vmatmul.mubr.f32.vlgmr.msra.gmra.mrb[8].mxu1 %v675_v59  ;;  %1322 = vmatprep.subr.bf16.mxu0 %v1359_v8 }
 0x3b3   :  { %1137 = vmatpush1.msk.msra.mxu1 %vm73_vm0, %v1657_v44  ;;  %905 = vmatprep.mubr.f32.mxu1 %v1358_v3 }
 0x3b4   :  { %1139 = vmatprep.subr.msk.mxu1 %vm73_vm0, %v1661_v45  ;;  %v1016_v45 = vld [vmem:[%s1931_s9 + $0x20] sm:$0xff] }
 0x3b5   :  { %1324 = vmatpush1.bf16.msra.mxu0 %v1323_v4  ;;  %v1326_v7 = vpack.c.bf16 %v1017_v6, %v1016_v45 }
 0x3b6   :  { %1325 = vmatprep.subr.bf16.mxu0 %v1359_v8 }
 0x3b9   :  { %1327 = vmatpush1.bf16.msra.mxu0 %v1326_v7 }
 0x3ba   :  { %1328 = vmatprep.subr.bf16.mxu0 %v1359_v8 }
 0x3bd   :  { %1330 = vmatpush1.bf16.msra.mxu0 %v1329_v14 }
 0x3be   :  { %1331 = vmatprep.subr.bf16.mxu0 %v1359_v8 }
 0x3c1   :  { %1333 = vmatpush1.bf16.msra.mxu0 %v1332_v18 }
 0x3c2   :  { %1334 = vmatprep.subr.bf16.mxu0 %v1359_v8 }
 0x3c5   :  { %1336 = vmatpush1.bf16.msra.mxu0 %v1335_v21 }
 0x3c6   :  { %1337 = vmatprep.subr.bf16.mxu0 %v1359_v8 }
 0x3c9   :  { %1339 = vmatpush1.bf16.msra.mxu0 %v1338_v10 }
 0x3ca   :  { %1340 = vmatprep.subr.bf16.mxu0 %v1359_v8 }
 0x483   :  { %v752_v22 = vpop.f32.mrb[4].mxu0 }
 0x484   :  { %v829_v23 = vmul.f32 0.013888889, %v752_v22  ;;  %v754_v24 = vpop.f32.mrb[5].mxu0 }
 0x485   :  { %v825_v25 = vpop.f32.mrb[8].mxu1 }
 0x486   :  { %v831_v26 = vmul.f32 %v829_v23, %v829_v23  ;;  %v830_v27 = vmul.f32 0.013888889, %v825_v25  ;;  %v827_v28 = vpop.f32.mrb[9].mxu1 }
 0x488   :  { %v832_v29 = vsub.f32 %v830_v27, %v831_v26 }
 0x48a   :  { %v833_v31 = vadd.f32 1e-05, %v832_v29 }
 0x48c   :  { %1352 = vrsqrt.f32 %v833_v31 }
 0x496   :  { %v1353_v37 = vpop.eup %1352 }
 0x497   :  { %v835_v46 = vmul.f32 %v1353_v37, %v651_v32 }
 0x499   :  { %1138 = vmatmul.mubr.msk.f32.vlgmr.msra.gmra.mrb[10].mxu1 %vm362_vm7, %v835_v46  ;;  %v836_v62 = vmul.f32 %v835_v46, %v829_v23 }
 0x49a   :  { %1140 = vmatpush1.msk.msra.mxu1 %vm73_vm0, %v1657_v44  ;;  %979 = vmatprep.mubr.f32.mxu1 %v1358_v3  ;;  %v1026_v44 = vld [vmem:[%s1931_s9 + $0x70] sm:$0xff]  ;;  %v1027_v3 = vld [vmem:[%s1931_s9 + $0x78] sm:$0xff] }
 0x49b   :  { %v837_v1 = vsub.f32 %v652_v58, %v836_v62  ;;  %v1341_v13 = vpack.c.bf16 %v1027_v3, %v1026_v44 }
 0x49d   :  { %1141 = vmatmul.mubr.msk.f32.vlgmr.msra.gmra.mrb[12].mxu1 %vm362_vm7, %v837_v1  ;;  %1342 = vmatpush1.bf16.msra.mxu0 %v1341_v13 }
 0x49e   :  { %1343 = vmatprep.subr.bf16.mxu0 %v1359_v8 }
 0x4a1   :  { %1345 = vmatpush1.bf16.msra.mxu0 %v1344_v35 }
 0x56c   :  { %v907_v38 = vpop.f32.mrb[10].mxu1 }
 0x56d   :  { %v989_v39 = vrot.slane %v907_v38, %v1789_v15  ;;  %v909_v40 = vpop.f32.mrb[11].mxu1 }
 0x56e   :  { %v993_v8 = vrot.slane %v909_v40, %v1789_v15 }
 0x56f   :  { %v994_v41 = vmul.f32 %v989_v39, %v1817_v30  ;;  %v1142_v30 = vld [vmem:[#allocation2] ss:$0 sm:$0xff] }
 0x570   :  { %v995_v42 = vmul.f32 %v993_v8, %v1823_v54  ;;  %v981_v43 = vpop.f32.mrb[12].mxu1 }
 0x571   :  { %v999_v47 = vrot.slane %v981_v43, %v1789_v15  ;;  %v983_v48 = vpop.f32.mrb[13].mxu1 }
 0x572   :  { %v1003_v49 = vrot.slane %v983_v48, %v1789_v15 }
 0x573   :  { %v1004_v50 = vadd.f32 %v999_v47, %v994_v41 }
 0x574   :  { %v1005_v51 = vadd.f32 %v1003_v49, %v995_v42 }
 0x575   :  { %v1008_v52 = vmul.f32 0.2, %v1004_v50  ;;  %vm1006_vm11 = vcmp.ge.f32.partialorder %v1004_v50, 0.0 }
 0x576   :  { %v1009_v53 = vmul.f32 0.2, %v1005_v51  ;;  %vm1007_vm10 = vcmp.ge.f32.partialorder %v1005_v51, 0.0 }
 0x577   :  { %v1010_v56 = vsel %vm1006_vm11, %v1004_v50, %v1008_v52 }
 0x578   :  { %v1011_v55 = vsel %vm1007_vm10, %v1005_v51, %v1009_v53 }
 0x579   :  { %1143 = vmatprep.mubr.msk.f32.mxu0 %vm203_vm6, %v1011_v55 }
 0x57a   :  { %1105 = vmatmul.mubr.f32.vlgmr.msra.gmra.mrb[6].mxu0 %v1010_v56 }
 0x64d   :  { %v1106_v57 = vpop.f32.mrb[6].mxu0 }
 0x64e   :  { %v1107_v54 = vadd.f32 %v1142_v30, %v1106_v57  ;;  %v1108_v59 = vpop.f32.mrb[7].mxu0 }
 0x650   :  { %v1144_v60 = vmul.f32 -1.442695, %v1107_v54 }
 0x652   :  { %1354 = vpow2.f32 %v1144_v60 }
 0x65c   :  { %v1355_v61 = vpop.eup %1354 }
 0x65d   :  { %v1113_v63 = vadd.f32 1.0, %v1355_v61 }
 0x65f   :  { %1356 = vrcp.f32 %v1113_v63 }
 0x669   :  { %v1357_v15 = vpop.eup %1356 }
 0x66a   :  { %1117 = vst.msk [vmem:[%s1935_s11] sm:$0x3] %vm1116_vm12, %v1357_v15 }

</bundles_post_ra>
